<compile_context>
chip_gen: v5e
topology: v5e:2x2
jax: 0.10.0
libtpu: 0.0.40
codegen_flags: <defaults>
</compile_context>

<pallas_src>
import numpy as np
import jax
import jax.numpy as jnp
from jax.experimental import pallas as pl
from jax.experimental.pallas import tpu as pltpu


# --------------------------------- kernel ------------------------------------

def make_rank_loss_kernel(N, TM, D, *, margin_1, margin_2, alpha_1, alpha_2,
                          tval, norm, matmul_bf16):
    dm1 = float(margin_1 - alpha_1)
    dm2 = float(margin_2 - alpha_2)
    a1 = float(alpha_1)
    a2 = float(alpha_2)
    tv = float(tval)
    dn = (((1,), (1,)), ((), ()))            # contract the feature dim (A @ B.T)

    def kernel(*refs):
        if norm:
            xa_ref, xf_ref, tc_ref, tr_ref, sc_ref, sr_ref, out_ref = refs
        else:
            (xa_ref, xf_ref, tc_ref, tr_ref, sc_ref, sr_ref,
             qa_ref, qf_ref, out_ref) = refs

        xa = xa_ref[...]                     # (TM, D) anchor rows (pre-normalized)
        xf = xf_ref[...]                     # (N, D)  all rows (pre-normalized)

        # single Gram matmul; optional bf16 operands for MXU-native throughput
        if matmul_bf16:
            g = jax.lax.dot_general(xa.astype(jnp.bfloat16),
                                    xf.astype(jnp.bfloat16), dn,
                                    preferred_element_type=jnp.float32)
        else:
            g = jax.lax.dot_general(xa, xf, dn,
                                    preferred_element_type=jnp.float32)

        if norm:
            d2 = 2.0 - 2.0 * g               # unit-norm rows: ||a||^2=||b||^2=1
        else:
            d2 = qa_ref[...] + qf_ref[...] - 2.0 * g
        dist = jnp.sqrt(jnp.maximum(d2, 1e-12))          # (TM, N)

        # masks from label vectors (built in-kernel; no O(N^2) HBM inputs)
        eq_t = tc_ref[...] == tr_ref[...]                # (TM, N)
        same_s = sc_ref[...] == sr_ref[...]              # (TM, N)
        row_ids = (pl.program_id(0) * TM
                   + jax.lax.broadcasted_iota(jnp.int32, (TM, 1), 0))
        col_ids = jax.lax.broadcasted_iota(jnp.int32, (1, N), 1)
        not_self = row_ids != col_ids                    # broadcast -> (TM, N)

        same_f = jnp.where(same_s, 1.0, 0.0)
        pos_f = jnp.where(jnp.logical_and(eq_t, not_self), 1.0, 0.0)
        neg = jnp.logical_not(eq_t)

        # branch-merged per-pair constants
        dm_sel = jnp.where(same_s, dm1, dm2)             # margin - alpha
        a_sel = jnp.where(same_s, a1, a2)                # alpha

        # -------- positive (ap) term (one clamp; split sums via intra mask) ----
        ap = jnp.maximum(dist + dm_sel, 0.0) * pos_f
        ap_i = ap * same_f
        pos_i_f = pos_f * same_f
        sum_ap = jnp.sum(ap, axis=-1, keepdims=True)
        sum_ap_i = jnp.sum(ap_i, axis=-1, keepdims=True)
        cnt = jnp.sum(pos_f, axis=-1, keepdims=True)
        cnt_i = jnp.sum(pos_i_f, axis=-1, keepdims=True)
        loss_ap = (sum_ap_i / (cnt_i + 1e-5)
                   + (sum_ap - sum_ap_i) / ((cnt - cnt_i) + 1e-5))

        # -------- negative (an) term (one exp; split sums via intra mask) ------
        diff = a_sel - dist
        e_arg = diff if tv == 1.0 else tv * diff
        w = jnp.where(jnp.logical_and(neg, dist < a_sel), jnp.exp(e_arg), 0.0)
        num = diff * w
        w_i = w * same_f
        num_i = num * same_f
        sw = jnp.sum(w, axis=-1, keepdims=True)
        sw_i = jnp.sum(w_i, axis=-1, keepdims=True)
        sn = jnp.sum(num, axis=-1, keepdims=True)
        sn_i = jnp.sum(num_i, axis=-1, keepdims=True)
        loss_an = (sn_i / (sw_i + 1e-5)
                   + (sn - sn_i) / ((sw - sw_i) + 1e-5))

        out_ref[...] = loss_ap + loss_an                 # per-anchor-row loss

    return kernel


# -------------------------------- wrapper -------------------------------------

def rank_loss_pallas(x, targets, sub, *, margin_1=1.0, margin_2=1.5,
                     alpha_1=2.4, alpha_2=2.2, tval=1.0, norm=True,
                     block_rows=None, matmul_bf16=False):
    x = jnp.asarray(x, jnp.float32)
    N, D = x.shape
    t = jnp.asarray(targets, jnp.int32)
    s = jnp.asarray(sub, jnp.int32)

    # normalize ONCE in the wrapper (torch F.normalize(dim=1, p=2) semantics)
    if norm:
        nrm = jnp.sqrt(jnp.sum(x * x, axis=1, keepdims=True))
        xn = x / jnp.maximum(nrm, 1e-12)
    else:
        xn = x

    TM = block_rows if block_rows is not None else min(N, 256)
    assert N % TM == 0, "anchor-row tile must divide N (pad on the host otherwise)"
    grid = (N // TM,)

    inputs = [xn, xn,
              t.reshape(N, 1), t.reshape(1, N),
              s.reshape(N, 1), s.reshape(1, N)]
    in_specs = [
        pl.BlockSpec((TM, D), lambda i: (i, 0)),   # anchor feature rows
        pl.BlockSpec((N, D), lambda i: (0, 0)),    # full features (resident)
        pl.BlockSpec((TM, 1), lambda i: (i, 0)),   # anchor targets (col)
        pl.BlockSpec((1, N), lambda i: (0, 0)),    # all targets (row)
        pl.BlockSpec((TM, 1), lambda i: (i, 0)),   # anchor sub (col)
        pl.BlockSpec((1, N), lambda i: (0, 0)),    # all sub (row)
    ]
    if not norm:
        sq = jnp.sum(xn * xn, axis=1)              # precomputed squared norms
        inputs += [sq.reshape(N, 1), sq.reshape(1, N)]
        in_specs += [pl.BlockSpec((TM, 1), lambda i: (i, 0)),
                     pl.BlockSpec((1, N), lambda i: (0, 0))]

    # raise the scoped VMEM limit only when the footprint estimate needs it
    est_bytes = 4 * (4 * TM * D + 4 * N * D + 14 * TM * N) + (2 << 20)
    cp_kwargs = {"dimension_semantics": ("parallel",)}   # independent row tiles
    if est_bytes > (32 << 20):
        cp_kwargs["vmem_limit_bytes"] = int(min(est_bytes, 112 << 20))

    kernel = make_rank_loss_kernel(
        N, TM, D, margin_1=margin_1, margin_2=margin_2,
        alpha_1=alpha_1, alpha_2=alpha_2, tval=tval, norm=norm,
        matmul_bf16=matmul_bf16)

    per_row = pl.pallas_call(
        kernel,
        out_shape=jax.ShapeDtypeStruct((N, 1), jnp.float32),
        grid_spec=pltpu.PrefetchScalarGridSpec(
            num_scalar_prefetch=0,
            grid=grid,
            in_specs=in_specs,
            out_specs=pl.BlockSpec((TM, 1), lambda i: (i, 0)),
        ),
        compiler_params=pltpu.CompilerParams(**cp_kwargs),
    )(*inputs)

    # final reduction in f32 on the wrapper side (no accumulation-order issues)
    return jnp.sum(per_row) / N


# ----------------------- pure-numpy reference (torch-faithful) ----------------

def reference_rank_loss(x, targets, sub, *, margin_1=1.0, margin_2=1.5,
                        alpha_1=2.4, alpha_2=2.2, tval=1.0, norm=True):
    x = np.asarray(x, np.float64)
    n = x.shape[0]
    if norm:
        x = x / np.maximum(np.linalg.norm(x, axis=1, keepdims=True), 1e-12)
    sq = (x ** 2).sum(1, keepdims=True)
    d2 = sq + sq.T - 2.0 * (x @ x.T)
    dist = np.sqrt(np.clip(d2, 1e-12, None))
    t = np.asarray(targets)
    s = np.asarray(sub)

    loss = 0.0
    for i in range(n):
        is_pos = (t == t[i]).copy()
        is_pos[i] = False
        is_neg = t != t[i]
        intra = s == s[i]
        cross = ~intra
        mpi = is_pos & intra
        mpc = is_pos & cross
        mni = is_neg & intra
        mnc = is_neg & cross

        ap_i = np.clip(dist[i][mpi] + (margin_1 - alpha_1), 0, None)
        ap_c = np.clip(dist[i][mpc] + (margin_2 - alpha_2), 0, None)
        loss_ap = ap_i.sum() / (ap_i.size + 1e-5) + ap_c.sum() / (ap_c.size + 1e-5)

        dni = dist[i][mni]
        dnc = dist[i][mnc]
        li = dni[dni < alpha_1]
        lc = dnc[dnc < alpha_2]
        wi = np.exp(tval * (alpha_1 - li))
        wc = np.exp(tval * (alpha_2 - lc))
        wis = wi.sum() + 1e-5
        wcs = wc.sum() + 1e-5
        an_i = ((alpha_1 - li) * wi).sum()
        an_c = ((alpha_2 - lc) * wc).sum()
        loss += loss_ap + an_i / wis + an_c / wcs
    return loss / n


# ---------------------------------- main ---------------------------------------

if __name__ == "__main__":
    key = jax.random.PRNGKey(0)
    N, D = 8, 32
    x = jax.random.normal(key, (N, D), dtype=jnp.float32)
    targets = np.array([0, 0, 1, 1, 0, 1, 1, 0], dtype=np.int32)
    sub = np.array([0, 0, 0, 0, 1, 1, 1, 1], dtype=np.int32)

    loss = rank_loss_pallas(x, targets, sub)
    loss = jax.block_until_ready(loss)

    ref = reference_rank_loss(np.asarray(x), targets, sub)
    np.testing.assert_allclose(float(loss), float(ref), rtol=1e-4, atol=1e-4)

    print("KERNEL_OK")
</pallas_src>

<mosaic_0001>
module attributes {stable_mosaic.version = 11 : i64} {
  func.func @kernel(%arg0: i32, %arg1: memref<8x32xf32, #tpu.memory_space<vmem>>, %arg2: memref<8x32xf32, #tpu.memory_space<vmem>>, %arg3: memref<8x1xi32, #tpu.memory_space<vmem>>, %arg4: memref<1x8xi32, #tpu.memory_space<vmem>>, %arg5: memref<8x1xi32, #tpu.memory_space<vmem>>, %arg6: memref<1x8xi32, #tpu.memory_space<vmem>>, %arg7: memref<8x1xf32, #tpu.memory_space<vmem>>) attributes {dimension_semantics = [#tpu.dimension_semantics<parallel>], iteration_bounds = array<i64: 1>, scalar_prefetch = 0 : i64, scratch_operands = 0 : i64, tpu.core_type = #tpu.core_type<tc>, window_params = [{transform_indices = @transform_0, window_bounds = array<i64: 8, 32>}, {pipeline_mode = #tpu.pipeline_mode<synchronous>, transform_indices = @transform_1, window_bounds = array<i64: 8, 32>}, {transform_indices = @transform_2, window_bounds = array<i64: 8, 1>}, {pipeline_mode = #tpu.pipeline_mode<synchronous>, transform_indices = @transform_3, window_bounds = array<i64: 1, 8>}, {transform_indices = @transform_4, window_bounds = array<i64: 8, 1>}, {pipeline_mode = #tpu.pipeline_mode<synchronous>, transform_indices = @transform_5, window_bounds = array<i64: 1, 8>}, {transform_indices = @transform_6, window_bounds = array<i64: 8, 1>}]} {
    %c0 = arith.constant 0 : index
    %c0_0 = arith.constant 0 : index
    %0 = vector.load %arg1[%c0, %c0_0] : memref<8x32xf32, #tpu.memory_space<vmem>>, vector<8x32xf32>
    %c0_1 = arith.constant 0 : index
    %c0_2 = arith.constant 0 : index
    %1 = vector.load %arg2[%c0_1, %c0_2] : memref<8x32xf32, #tpu.memory_space<vmem>>, vector<8x32xf32>
    %cst = arith.constant dense<0.000000e+00> : vector<8x8xf32>
    %2 = tpu.matmul %0, %1, %cst {dimension_numbers = #tpu.dot_dimension_numbers<[1], [1], [0], [0], [0, 0, 1, 0], [], []>} : vector<8x32xf32>, vector<8x32xf32>, vector<8x8xf32> -> vector<8x8xf32>
    %cst_3 = arith.constant 2.000000e+00 : f32
    %3 = vector.broadcast %cst_3 : f32 to vector<8x8xf32>
    %4 = arith.mulf %3, %2 : vector<8x8xf32>
    %cst_4 = arith.constant 2.000000e+00 : f32
    %5 = vector.broadcast %cst_4 : f32 to vector<8x8xf32>
    %6 = arith.subf %5, %4 : vector<8x8xf32>
    %cst_5 = arith.constant 9.99999996E-13 : f32
    %7 = vector.broadcast %cst_5 : f32 to vector<8x8xf32>
    %8 = arith.maximumf %6, %7 : vector<8x8xf32>
    %9 = math.sqrt %8 : vector<8x8xf32>
    %c0_6 = arith.constant 0 : index
    %c0_7 = arith.constant 0 : index
    %10 = vector.load %arg3[%c0_6, %c0_7] : memref<8x1xi32, #tpu.memory_space<vmem>>, vector<8x1xi32>
    %c0_8 = arith.constant 0 : index
    %c0_9 = arith.constant 0 : index
    %11 = vector.load %arg4[%c0_8, %c0_9] : memref<1x8xi32, #tpu.memory_space<vmem>>, vector<1x8xi32>
    %12 = vector.broadcast %10 : vector<8x1xi32> to vector<8x8xi32>
    %13 = vector.broadcast %11 : vector<1x8xi32> to vector<8x8xi32>
    %14 = arith.cmpi eq, %12, %13 : vector<8x8xi32>
    %c0_10 = arith.constant 0 : index
    %c0_11 = arith.constant 0 : index
    %15 = vector.load %arg5[%c0_10, %c0_11] : memref<8x1xi32, #tpu.memory_space<vmem>>, vector<8x1xi32>
    %c0_12 = arith.constant 0 : index
    %c0_13 = arith.constant 0 : index
    %16 = vector.load %arg6[%c0_12, %c0_13] : memref<1x8xi32, #tpu.memory_space<vmem>>, vector<1x8xi32>
    %17 = vector.broadcast %15 : vector<8x1xi32> to vector<8x8xi32>
    %18 = vector.broadcast %16 : vector<1x8xi32> to vector<8x8xi32>
    %19 = arith.cmpi eq, %17, %18 : vector<8x8xi32>
    %c8_i32 = arith.constant 8 : i32
    %20 = arith.muli %arg0, %c8_i32 : i32
    %21 = tpu.iota {dimensions = array<i32: 0>} : vector<8x1xi32>
    %22 = vector.broadcast %20 : i32 to vector<8x1xi32>
    %23 = arith.addi %22, %21 : vector<8x1xi32>
    %24 = tpu.iota {dimensions = array<i32: 1>} : vector<1x8xi32>
    %25 = vector.broadcast %23 : vector<8x1xi32> to vector<8x8xi32>
    %26 = vector.broadcast %24 : vector<1x8xi32> to vector<8x8xi32>
    %27 = arith.cmpi ne, %25, %26 : vector<8x8xi32>
    %cst_14 = arith.constant 1.000000e+00 : f32
    %cst_15 = arith.constant 0.000000e+00 : f32
    %28 = vector.broadcast %cst_14 : f32 to vector<8x8xf32>
    %29 = vector.broadcast %cst_15 : f32 to vector<8x8xf32>
    %30 = arith.select %19, %28, %29 : vector<8x8xi1>, vector<8x8xf32>
    %31 = arith.andi %14, %27 : vector<8x8xi1>
    %cst_16 = arith.constant 1.000000e+00 : f32
    %cst_17 = arith.constant 0.000000e+00 : f32
    %32 = vector.broadcast %cst_16 : f32 to vector<8x8xf32>
    %33 = vector.broadcast %cst_17 : f32 to vector<8x8xf32>
    %34 = arith.select %31, %32, %33 : vector<8x8xi1>, vector<8x8xf32>
    %cst_18 = arith.constant dense<true> : vector<8x8xi1>
    %35 = arith.xori %14, %cst_18 : vector<8x8xi1>
    %cst_19 = arith.constant -1.400000e+00 : f32
    %cst_20 = arith.constant -0.699999988 : f32
    %36 = vector.broadcast %cst_19 : f32 to vector<8x8xf32>
    %37 = vector.broadcast %cst_20 : f32 to vector<8x8xf32>
    %38 = arith.select %19, %36, %37 : vector<8x8xi1>, vector<8x8xf32>
    %cst_21 = arith.constant 2.400000e+00 : f32
    %cst_22 = arith.constant 2.200000e+00 : f32
    %39 = vector.broadcast %cst_21 : f32 to vector<8x8xf32>
    %40 = vector.broadcast %cst_22 : f32 to vector<8x8xf32>
    %41 = arith.select %19, %39, %40 : vector<8x8xi1>, vector<8x8xf32>
    %42 = arith.addf %9, %38 : vector<8x8xf32>
    %cst_23 = arith.constant 0.000000e+00 : f32
    %43 = vector.broadcast %cst_23 : f32 to vector<8x8xf32>
    %44 = arith.maximumf %42, %43 : vector<8x8xf32>
    %45 = arith.mulf %44, %34 : vector<8x8xf32>
    %46 = arith.mulf %45, %30 : vector<8x8xf32>
    %47 = arith.mulf %34, %30 : vector<8x8xf32>
    %cst_24 = arith.constant dense<0.000000e+00> : vector<8xf32>
    %48 = vector.multi_reduction <add>, %45, %cst_24 [1] : vector<8x8xf32> to vector<8xf32>
    %49 = vector.shape_cast %48 : vector<8xf32> to vector<8x1xf32>
    %cst_25 = arith.constant dense<0.000000e+00> : vector<8xf32>
    %50 = vector.multi_reduction <add>, %46, %cst_25 [1] : vector<8x8xf32> to vector<8xf32>
    %51 = vector.shape_cast %50 : vector<8xf32> to vector<8x1xf32>
    %cst_26 = arith.constant dense<0.000000e+00> : vector<8xf32>
    %52 = vector.multi_reduction <add>, %34, %cst_26 [1] : vector<8x8xf32> to vector<8xf32>
    %53 = vector.shape_cast %52 : vector<8xf32> to vector<8x1xf32>
    %cst_27 = arith.constant dense<0.000000e+00> : vector<8xf32>
    %54 = vector.multi_reduction <add>, %47, %cst_27 [1] : vector<8x8xf32> to vector<8xf32>
    %55 = vector.shape_cast %54 : vector<8xf32> to vector<8x1xf32>
    %cst_28 = arith.constant 9.99999974E-6 : f32
    %56 = vector.broadcast %cst_28 : f32 to vector<8x1xf32>
    %57 = arith.addf %55, %56 : vector<8x1xf32>
    %58 = arith.divf %51, %57 : vector<8x1xf32>
    %59 = arith.subf %49, %51 : vector<8x1xf32>
    %60 = arith.subf %53, %55 : vector<8x1xf32>
    %cst_29 = arith.constant 9.99999974E-6 : f32
    %61 = vector.broadcast %cst_29 : f32 to vector<8x1xf32>
    %62 = arith.addf %60, %61 : vector<8x1xf32>
    %63 = arith.divf %59, %62 : vector<8x1xf32>
    %64 = arith.addf %58, %63 : vector<8x1xf32>
    %65 = arith.subf %41, %9 : vector<8x8xf32>
    %66 = arith.cmpf olt, %9, %41 : vector<8x8xf32>
    %67 = arith.andi %35, %66 : vector<8x8xi1>
    %68 = math.exp %65 : vector<8x8xf32>
    %cst_30 = arith.constant 0.000000e+00 : f32
    %69 = vector.broadcast %cst_30 : f32 to vector<8x8xf32>
    %70 = arith.select %67, %68, %69 : vector<8x8xi1>, vector<8x8xf32>
    %71 = arith.mulf %65, %70 : vector<8x8xf32>
    %72 = arith.mulf %70, %30 : vector<8x8xf32>
    %73 = arith.mulf %71, %30 : vector<8x8xf32>
    %cst_31 = arith.constant dense<0.000000e+00> : vector<8xf32>
    %74 = vector.multi_reduction <add>, %70, %cst_31 [1] : vector<8x8xf32> to vector<8xf32>
    %75 = vector.shape_cast %74 : vector<8xf32> to vector<8x1xf32>
    %cst_32 = arith.constant dense<0.000000e+00> : vector<8xf32>
    %76 = vector.multi_reduction <add>, %72, %cst_32 [1] : vector<8x8xf32> to vector<8xf32>
    %77 = vector.shape_cast %76 : vector<8xf32> to vector<8x1xf32>
    %cst_33 = arith.constant dense<0.000000e+00> : vector<8xf32>
    %78 = vector.multi_reduction <add>, %71, %cst_33 [1] : vector<8x8xf32> to vector<8xf32>
    %79 = vector.shape_cast %78 : vector<8xf32> to vector<8x1xf32>
    %cst_34 = arith.constant dense<0.000000e+00> : vector<8xf32>
    %80 = vector.multi_reduction <add>, %73, %cst_34 [1] : vector<8x8xf32> to vector<8xf32>
    %81 = vector.shape_cast %80 : vector<8xf32> to vector<8x1xf32>
    %cst_35 = arith.constant 9.99999974E-6 : f32
    %82 = vector.broadcast %cst_35 : f32 to vector<8x1xf32>
    %83 = arith.addf %77, %82 : vector<8x1xf32>
    %84 = arith.divf %81, %83 : vector<8x1xf32>
    %85 = arith.subf %79, %81 : vector<8x1xf32>
    %86 = arith.subf %75, %77 : vector<8x1xf32>
    %cst_36 = arith.constant 9.99999974E-6 : f32
    %87 = vector.broadcast %cst_36 : f32 to vector<8x1xf32>
    %88 = arith.addf %86, %87 : vector<8x1xf32>
    %89 = arith.divf %85, %88 : vector<8x1xf32>
    %90 = arith.addf %84, %89 : vector<8x1xf32>
    %91 = arith.addf %64, %90 : vector<8x1xf32>
    %c0_37 = arith.constant 0 : index
    %c0_38 = arith.constant 0 : index
    %92 = vector.load %arg7[%c0_37, %c0_38] : memref<8x1xf32, #tpu.memory_space<vmem>>, vector<8x1xf32>
    tpu.vector_store %arg7[%c0_37, %c0_38], %91 {strides = array<i32>} : memref<8x1xf32, #tpu.memory_space<vmem>>, vector<8x1xf32>,
    return
  }
  func.func @transform_0(%arg0: i32) -> (i32, i32) {
    %c0_i32 = arith.constant 0 : i32
    %c0_i32_0 = arith.constant 0 : i32
    return %arg0, %c0_i32 : i32, i32
  }
  func.func @transform_1(%arg0: i32) -> (i32, i32) {
    %c0_i32 = arith.constant 0 : i32
    %c0_i32_0 = arith.constant 0 : i32
    %c0_i32_1 = arith.constant 0 : i32
    return %c0_i32, %c0_i32_0 : i32, i32
  }
  func.func @transform_2(%arg0: i32) -> (i32, i32) {
    %c0_i32 = arith.constant 0 : i32
    %c0_i32_0 = arith.constant 0 : i32
    return %arg0, %c0_i32 : i32, i32
  }
  func.func @transform_3(%arg0: i32) -> (i32, i32) {
    %c0_i32 = arith.constant 0 : i32
    %c0_i32_0 = arith.constant 0 : i32
    %c0_i32_1 = arith.constant 0 : i32
    return %c0_i32, %c0_i32_0 : i32, i32
  }
  func.func @transform_4(%arg0: i32) -> (i32, i32) {
    %c0_i32 = arith.constant 0 : i32
    %c0_i32_0 = arith.constant 0 : i32
    return %arg0, %c0_i32 : i32, i32
  }
  func.func @transform_5(%arg0: i32) -> (i32, i32) {
    %c0_i32 = arith.constant 0 : i32
    %c0_i32_0 = arith.constant 0 : i32
    %c0_i32_1 = arith.constant 0 : i32
    return %c0_i32, %c0_i32_0 : i32, i32
  }
  func.func @transform_6(%arg0: i32) -> (i32, i32) {
    %c0_i32 = arith.constant 0 : i32
    %c0_i32_0 = arith.constant 0 : i32
    return %arg0, %c0_i32 : i32, i32
  }
}

</mosaic_0001>

<bundles_post_ra>
// kernel: tpu_custom_call.1
= control target key start
LH: loop header
LB: loop body
LE: loop exit
PB: predicated region body
PF: predicated region fallthrough
CT: control target
= control target key end

     0   :  { %vm25_vm0 = vcmask 261120   ;;  %v233_v1 = vmov 0   ;;  %v82_v5 = vlaneseq  ;;  %vm100_vm4 = vcmask 64512   ;;  %s331_s1 = inlined_call_operand.vmem [shape: f32[8,32], index: 1, kind: input, shape index: {}]   ;;  %s332_s0 = inlined_call_operand.vmem [shape: f32[8,32], index: 0, kind: input, shape index: {}]   ;;  %s333_s4 = inlined_call_operand.vmem [shape: s32[8,1], index: 4, kind: input, shape index: {}]   ;;  %s334_s5 = inlined_call_operand.vmem [shape: s32[1,8], index: 5, kind: input, shape index: {}]   ;;  %s335_s2 = inlined_call_operand.vmem [shape: s32[8,1], index: 2, kind: input, shape index: {}]   ;;  %s336_s3 = inlined_call_operand.vmem [shape: s32[1,8], index: 3, kind: input, shape index: {}]   ;;  %s337_s6 = inlined_call_operand.vmem [shape: f32[8,1], index: 6, kind: output, shape index: {}]  }
   0x1   :  { %v24_v0 = vld [vmem:[%s331_s1] sm:$0xff]  ;;  %218 = vset.pattern.permute.xlu0 %v233_v1  ;;  %v234_v12 = vmov 0.0   ;;  %v235_v29 = vmov -0.7   ;;  %v236_v31 = vmov 2.2  }
   0x2   :  { %v74_v2 = vld [vmem:[%s333_s4] sm:$0xff]  ;;  %211 = vmatpush.xpose.msk.msra.mxu0 %vm25_vm0, %v24_v0  ;;  %v83_v7 = vshrl.u32 %v82_v5, 7  ;;  %v87_v8 = vand.u32 127, %v82_v5  ;;  %vm237_vm8 = vmmov 1  }
   0x3   :  { %v23_v3 = vld [vmem:[%s332_s0] sm:$0xff]  ;;  %77 = vperm.xlu0 %218, %v74_v2  }
   0x4   :  { %v67_v4 = vld [vmem:[%s335_s2] sm:$0xff]  ;;  %vm88_vm1 = vcmp.ne.s32.totalorder %v83_v7, %v87_v8 }
   0x5   :  { %212 = vmatmul.msk.f32.vlgmr.msra.gmra.mxu0 %vm25_vm0, %v23_v3  ;;  %v219_v9 = vld [vmem:[%s334_s5] ss:$0 sm:$0xff] }
   0x6   :  { %v220_v10 = vld [vmem:[%s336_s3] ss:$0 sm:$0xff] }
   0xb   :  { %70 = vperm.xlu0 %218, %v67_v4  }
  0x75   :  { %v78_v6 = vpop.permute.xlu0 %77 }
  0x76   :  { %vm80_vm2 = vcmp.eq.s32.totalorder %v78_v6, %v219_v9 }
  0x77   :  { %v89_v13 = vsel %vm80_vm2, 1.0, %v234_v12  ;;  %v93_v30 = vsel %vm80_vm2, -1.4, %v235_v29  ;;  %v94_v32 = vsel %vm80_vm2, 2.4, %v236_v31 }
  0x7d   :  { %v71_v11 = vpop.permute.xlu0 %70 }
  0x7e   :  { %vm73_vm3 = vcmp.eq.s32.totalorder %v71_v11, %v220_v10 }
  0x7f   :  { %vm90_vm5 = vmand %vm73_vm3, %vm88_vm1 }
  0x80   :  { %v91_v14 = vsel %vm90_vm5, 1.0, %v234_v12  ;;  %vm92_vm9 = vmxor %vm73_vm3, %vm237_vm8 }
  0x81   :  { %v107_v15 = vsel %vm100_vm4, %v91_v14, 0.0  ;;  %v99_v17 = vmul.f32 %v91_v14, %v89_v13 }
  0x82   :  { %108 = vadd.xlane.f32.xlu1 %v107_v15  ;;  %v49_v16 = vpop.f32.mrf.mxu0 }
  0x83   :  { %v52_v18 = vmul.f32 2.0, %v49_v16  ;;  %v110_v20 = vsel %vm100_vm4, %v99_v17, 0.0 }
  0x85   :  { %v53_v19 = vsub.f32 2.0, %v52_v18 }
  0x87   :  { %v54_v21 = vmax.f32 %v53_v19, 1e-12 }
  0x89   :  { %221 = vrsqrt.f32 %v54_v21  ;;  %vm62_vm6 = vcmp.eq.f32.partialorder %v54_v21, inf  ;;  %v65_v33 = vand.u32 2147483648, %v54_v21  ;;  %vm64_vm7 = vcmp.eq.f32.partialorder %v54_v21, 0.0 }
  0x8a   :  { %111 = vadd.xlane.f32.xlu1 %v110_v20 }
  0x8f   :  { %v222_v22 = vpop.eup %221 }
  0x90   :  { %v56_v23 = vmul.f32 %v222_v22, %v54_v21 }
  0x92   :  { %v57_v24 = vmul.f32 %v222_v22, %v56_v23 }
  0x94   :  { %v58_v25 = vmul.f32 0.5, %v57_v24 }
  0x96   :  { %v59_v26 = vsub.f32 1.5, %v58_v25 }
  0x98   :  { %v60_v27 = vmul.f32 %v222_v22, %v59_v26 }
  0x9a   :  { %v61_v28 = vmul.f32 %v60_v27, %v54_v21 }
  0x9c   :  { %v63_v34 = vsel %vm62_vm6, %v54_v21, %v61_v28 }
  0x9d   :  { %v66_v35 = vsel %vm64_vm7, %v65_v33, %v63_v34 }
  0x9e   :  { %v95_v36 = vadd.f32 %v93_v30, %v66_v35  ;;  %v148_v37 = vsub.f32 %v94_v32, %v66_v35  ;;  %vm149_vm10 = vcmp.lt.f32.partialorder %v66_v35, %v94_v32 }
  0x9f   :  { %vm150_vm11 = vmand %vm92_vm9, %vm149_vm10 }
  0xa0   :  { %v96_v38 = vmax.f32 %v95_v36, 0.0  ;;  %v151_v39 = vmul.f32 1.442695, %v148_v37 }
  0xa2   :  { %v97_v40 = vmul.f32 %v96_v38, %v91_v14  ;;  %223 = vpow2.f32 %v151_v39 }
  0xa4   :  { %v101_v41 = vsel %vm100_vm4, %v97_v40, 0.0  ;;  %v98_v42 = vmul.f32 %v97_v40, %v89_v13 }
  0xa5   :  { %102 = vadd.xlane.f32.xlu0 %v101_v41 }
  0xa6   :  { %v104_v43 = vsel %vm100_vm4, %v98_v42, 0.0 }
  0xa7   :  { %105 = vadd.xlane.f32.xlu1 %v104_v43 }
  0xa8   :  { %v224_v44 = vpop.eup %223 }
  0xa9   :  { %v153_v45 = vsel %vm150_vm11, %v224_v44, 0.0 }
  0xaa   :  { %v157_v46 = vsel %vm100_vm4, %v153_v45, 0.0  ;;  %v154_v47 = vmul.f32 %v153_v45, %v148_v37  ;;  %v155_v50 = vmul.f32 %v153_v45, %v89_v13 }
  0xab   :  { %158 = vadd.xlane.f32.xlu2 %v157_v46 }
  0xac   :  { %v156_v48 = vmul.f32 %v154_v47, %v89_v13  ;;  %v160_v51 = vsel %vm100_vm4, %v155_v50, 0.0  ;;  %v163_v52 = vsel %vm100_vm4, %v154_v47, 0.0 }
  0xae   :  { %v166_v49 = vsel %vm100_vm4, %v156_v48, 0.0 }
  0xaf   :  { %167 = vadd.xlane.f32.xlu1 %v166_v49 }
  0xb3   :  { %161 = vadd.xlane.f32.xlu2 %v160_v51 }
  0xbb   :  { %164 = vadd.xlane.f32.xlu2 %v163_v52 }
  0xf5   :  { %v109_v53 = vpop.xlane.xlu1 %108 }
  0xfd   :  { %v112_v54 = vpop.xlane.xlu1 %111 }
  0xfe   :  { %v130_v55 = vsub.f32 %v109_v53, %v112_v54  ;;  %v113_v57 = vadd.f32 1e-05, %v112_v54 }
 0x100   :  { %v131_v56 = vadd.f32 1e-05, %v130_v55  ;;  %vm119_vm14 = vweird.f32 %v113_v57  ;;  %v123_v7 = vand.u32 2147483647, %v113_v57  ;;  %v125_v8 = vand.u32 2147483648, %v113_v57 }
 0x102   :  { %225 = vrcp.f32 %v131_v56  ;;  %vm137_vm12 = vweird.f32 %v131_v56  ;;  %v141_v11 = vand.u32 2147483647, %v131_v56  ;;  %v143_v12 = vand.u32 2147483648, %v131_v56 }
 0x103   :  { %227 = vrcp.f32 %v113_v57  ;;  %vm312_vm2 = vcmp.eq.f32.partialorder %v123_v7, 8.507059e+37  ;;  %v126_v20 = vor.u32 1.1754944e-38, %v125_v8 }
 0x104   :  { %vm318_vm3 = vcmp.eq.f32.partialorder %v141_v11, 8.507059e+37  ;;  %v144_v25 = vor.u32 1.1754944e-38, %v143_v12 }
 0x108   :  { %v226_v59 = vpop.eup %225 }
 0x109   :  { %v228_v60 = vpop.eup %227  ;;  %v133_v61 = vmul.f32 %v226_v59, %v131_v56  ;;  %vm138_vm13 = vweird.f32 %v226_v59 }
 0x10a   :  { %v115_v62 = vmul.f32 %v228_v60, %v113_v57  ;;  %vm120_vm15 = vweird.f32 %v228_v60  ;;  %vm304_vm0 = vmor %vm137_vm12, %vm138_vm13  ;;  %vm205_vm12 = vcmask 7168  }
 0x10b   :  { %v134_v0 = vsub.f32 1.0, %v133_v61  ;;  %vm308_vm1 = vmor %vm119_vm14, %vm120_vm15 }
 0x10c   :  { %v116_v3 = vsub.f32 1.0, %v115_v62 }
 0x10d   :  { %v135_v5 = vmul.f32 %v226_v59, %v134_v0 }
 0x10e   :  { %v117_v6 = vmul.f32 %v228_v60, %v116_v3 }
 0x10f   :  { %v136_v10 = vadd.f32 %v226_v59, %v135_v5 }
 0x110   :  { %v118_v17 = vadd.f32 %v228_v60, %v117_v6 }
 0x111   :  { %v140_v23 = vsel %vm304_vm0, %v226_v59, %v136_v10 }
 0x112   :  { %v122_v31 = vsel %vm308_vm1, %v228_v60, %v118_v17  ;;  %v145_v37 = vsel %vm318_vm3, %v144_v25, %v140_v23 }
 0x113   :  { %v127_v42 = vsel %vm312_vm2, %v126_v20, %v122_v31 }
 0x118   :  { %v103_v27 = vpop.xlane.xlu0 %102 }
 0x11a   :  { %v106_v13 = vpop.xlane.xlu1 %105 }
 0x11b   :  { %v129_v32 = vsub.f32 %v103_v27, %v106_v13  ;;  %v128_v50 = vmul.f32 %v127_v42, %v106_v13 }
 0x11d   :  { %v146_v46 = vmul.f32 %v145_v37, %v129_v32 }
 0x11e   :  { %v159_v58 = vpop.xlane.xlu2 %158 }
 0x11f   :  { %v147_v53 = vadd.f32 %v146_v46, %v128_v50 }
 0x122   :  { %v168_v43 = vpop.xlane.xlu1 %167 }
 0x126   :  { %v162_v63 = vpop.xlane.xlu2 %161 }
 0x127   :  { %v169_v1 = vadd.f32 1e-05, %v162_v63  ;;  %v186_v2 = vsub.f32 %v159_v58, %v162_v63 }
 0x129   :  { %229 = vrcp.f32 %v169_v1  ;;  %v187_v4 = vadd.f32 1e-05, %v186_v2  ;;  %v181_v26 = vand.u32 2147483648, %v169_v1  ;;  %v179_v29 = vand.u32 2147483647, %v169_v1 }
 0x12a   :  { %vm175_vm5 = vweird.f32 %v169_v1 }
 0x12b   :  { %231 = vrcp.f32 %v187_v4  ;;  %v199_v33 = vand.u32 2147483648, %v187_v4  ;;  %v197_v36 = vand.u32 2147483647, %v187_v4  ;;  %v182_v38 = vor.u32 1.1754944e-38, %v181_v26 }
 0x12c   :  { %vm180_vm8 = vcmp.eq.f32.partialorder %v179_v29, 8.507059e+37  ;;  %vm193_vm9 = vweird.f32 %v187_v4 }
 0x12d   :  { %v200_v45 = vor.u32 1.1754944e-38, %v199_v33  ;;  %vm198_vm11 = vcmp.eq.f32.partialorder %v197_v36, 8.507059e+37 }
 0x12e   :  { %v165_v39 = vpop.xlane.xlu2 %164 }
 0x12f   :  { %v230_v9 = vpop.eup %229  ;;  %v185_v48 = vsub.f32 %v165_v39, %v168_v43 }
 0x130   :  { %v171_v15 = vmul.f32 %v230_v9, %v169_v1  ;;  %vm176_vm4 = vweird.f32 %v230_v9 }
 0x131   :  { %v232_v16 = vpop.eup %231  ;;  %vm177_vm7 = vmor %vm175_vm5, %vm176_vm4 }
 0x132   :  { %v172_v21 = vsub.f32 1.0, %v171_v15  ;;  %v189_v22 = vmul.f32 %v232_v16, %v187_v4  ;;  %vm194_vm6 = vweird.f32 %v232_v16 }
 0x133   :  { %vm195_vm10 = vmor %vm193_vm9, %vm194_vm6 }
 0x134   :  { %v173_v28 = vmul.f32 %v230_v9, %v172_v21  ;;  %v190_v30 = vsub.f32 1.0, %v189_v22 }
 0x136   :  { %v174_v34 = vadd.f32 %v230_v9, %v173_v28  ;;  %v191_v35 = vmul.f32 %v232_v16, %v190_v30 }
 0x138   :  { %v178_v40 = vsel %vm177_vm7, %v230_v9, %v174_v34  ;;  %v192_v41 = vadd.f32 %v232_v16, %v191_v35 }
 0x139   :  { %v183_v44 = vsel %vm180_vm8, %v182_v38, %v178_v40 }
 0x13a   :  { %v196_v47 = vsel %vm195_vm10, %v232_v16, %v192_v41  ;;  %v184_v51 = vmul.f32 %v183_v44, %v168_v43 }
 0x13b   :  { %v201_v49 = vsel %vm198_vm11, %v200_v45, %v196_v47 }
 0x13c   :  { %v202_v52 = vmul.f32 %v201_v49, %v185_v48 }
 0x13e   :  { %v203_v54 = vadd.f32 %v202_v52, %v184_v51 }
 0x140   :  { %v204_v55 = vadd.f32 %v203_v54, %v147_v53 }
 0x142   :  { %206 = vst.msk [vmem:[%s337_s6] sm:$0xff] %vm205_vm12, %v204_v55 }

</bundles_post_ra>
